<compile_context>
chip_gen: v5e
topology: v5e:2x2
jax: 0.10.0
libtpu: 0.0.40
codegen_flags: <defaults>
</compile_context>

<pallas_src>
import math
import functools

import jax
import jax.numpy as jnp
from jax import lax
from jax.experimental import pallas as pl
from jax.experimental.pallas import tpu as pltpu


def _vmem_capacity_bytes():
    """Per-TensorCore physical VMEM, queried at trace time (generation-aware)."""
    try:
        info = pltpu.get_tpu_info()
        cap = getattr(info, "vmem_capacity_bytes", None)
        if cap:
            return int(cap)
    except Exception:
        pass
    return 64 << 20  # conservative default (v7x per-core VMEM)


def _embed_resident_kernel(ids_ref, table_ref, out_ref, *, scale, block_tokens):
    """Gather rows from the VMEM-resident table for one block of tokens.

    ids_ref   : SMEM (n_pad,) int32 token ids (scalar-prefetched)
    table_ref : VMEM (vocab, d_model), whole array, single-buffered
    out_ref   : VMEM (block_tokens, d_model) scaled embeddings
    """
    base = pl.program_id(0) * block_tokens

    def body(t, carry):
        tok = ids_ref[base + t]                          # SMEM scalar read
        row = table_ref[pl.ds(tok, 1), :]                # (1, d_model) dynamic row load
        out_ref[pl.ds(t, 1), :] = (row * scale).astype(out_ref.dtype)
        return carry

    lax.fori_loop(0, block_tokens, body, 0)


def _embed_dma_gather_kernel(ids_ref, table_hbm, out_ref, row_buf, sems, *,
                             scale, block_tokens, n_sems):
    """Large-table fallback: per-row HBM DMA gather with n_sems outstanding copies.

    ids_ref   : SMEM (n_pad,) int32 token ids (scalar-prefetched)
    table_hbm : HBM (vocab, d_model) ref (memory_space=pl.ANY, no auto-DMA)
    out_ref   : VMEM (block_tokens, d_model)
    row_buf   : VMEM (block_tokens, d_model) gather landing buffer
    sems      : DMA semaphore ring (n_sems,)
    """
    base = pl.program_id(0) * block_tokens

    def start(t):
        tok = ids_ref[base + t]
        pltpu.make_async_copy(
            table_hbm.at[pl.ds(tok, 1), :],
            row_buf.at[pl.ds(t, 1), :],
            sems.at[t % n_sems],
        ).start()

    def wait_for(t):
        # Same-shaped descriptor (dummy src index) is sufficient to wait on the sem.
        pltpu.make_async_copy(
            table_hbm.at[pl.ds(0, 1), :],
            row_buf.at[pl.ds(t, 1), :],
            sems.at[t % n_sems],
        ).wait()

    def prime(t, c):
        start(t)
        return c

    def steady(t, c):
        wait_for(t - n_sems)
        start(t)
        return c

    def drain(t, c):
        wait_for(t)
        return c

    lax.fori_loop(0, n_sems, prime, 0)
    lax.fori_loop(n_sems, block_tokens, steady, 0)
    lax.fori_loop(block_tokens - n_sems, block_tokens, drain, 0)

    # sqrt(d_model) scale on the VPU; cost is O(tokens * d_model), vocab-independent.
    out_ref[...] = (row_buf[...] * scale).astype(out_ref.dtype)
    # TODO(synk): overlap block i+1's row-DMA gather with block i's writeback
    # (deeper manual pipeline) if profiling shows exposed DMA latency.


def embeddings_forward(token_ids, emb_table, *, block_tokens=512,
                       force_fallback=False):
    """Pallas equivalent of Embeddings.forward: gather(table, ids) * sqrt(d_model)."""
    B, S = token_ids.shape
    vocab, d_model = emb_table.shape
    n = B * S
    scale = float(math.sqrt(float(d_model)))

    # Flatten and clamp ids.  NOTE: nn.Embedding raises on out-of-range ids;
    # here OOB ids are clamped to [0, vocab-1] (documented deviation).
    flat_ids = token_ids.reshape(n).astype(jnp.int32)
    flat_ids = jnp.clip(flat_ids, 0, vocab - 1)

    # Token block: multiple of 8 (sublane), clamped so tiny inputs do not pad
    # all the way to 512 rows of wasted gather work.
    block_tokens = int(min(block_tokens, max(8, ((n + 7) // 8) * 8)))
    block_tokens = ((block_tokens + 7) // 8) * 8
    n_blocks = pl.cdiv(n, block_tokens)
    n_pad = n_blocks * block_tokens
    if n_pad != n:
        flat_ids = jnp.pad(flat_ids, (0, n_pad - n))

    # Generation-aware VMEM budget (leave headroom for compiler scratch and
    # the double-buffered output blocks).
    itemsize = jnp.dtype(emb_table.dtype).itemsize
    table_bytes = vocab * d_model * itemsize
    out_block_bytes = block_tokens * d_model * itemsize
    vmem_limit = int(_vmem_capacity_bytes() * 8 // 10)
    resident = (not force_fallback) and (
        table_bytes + 2 * out_block_bytes + (8 << 20) <= vmem_limit)

    if resident:
        kernel = functools.partial(
            _embed_resident_kernel, scale=scale, block_tokens=block_tokens)
        grid_spec = pltpu.PrefetchScalarGridSpec(
            num_scalar_prefetch=1,
            grid=(n_blocks,),
            in_specs=[
                # Whole embedding table, VMEM-resident, single buffer
                # (memory-space-only spec => one bulk DMA, no double-buffering).
                pl.BlockSpec(memory_space=pltpu.MemorySpace.VMEM),
            ],
            out_specs=pl.BlockSpec((block_tokens, d_model),
                                   lambda i, ids: (i, 0)),
        )
    else:
        n_sems = min(8, block_tokens)
        kernel = functools.partial(
            _embed_dma_gather_kernel, scale=scale,
            block_tokens=block_tokens, n_sems=n_sems)
        grid_spec = pltpu.PrefetchScalarGridSpec(
            num_scalar_prefetch=1,
            grid=(n_blocks,),
            in_specs=[
                # Table stays in HBM; rows are gathered with manual DMAs.
                pl.BlockSpec(memory_space=pl.ANY),
            ],
            out_specs=pl.BlockSpec((block_tokens, d_model),
                                   lambda i, ids: (i, 0)),
            scratch_shapes=[
                pltpu.VMEM((block_tokens, d_model), emb_table.dtype),
                pltpu.SemaphoreType.DMA((n_sems,)),
            ],
        )

    out_flat = pl.pallas_call(
        kernel,
        out_shape=jax.ShapeDtypeStruct((n_pad, d_model), emb_table.dtype),
        grid_spec=grid_spec,
        compiler_params=pltpu.CompilerParams(
            dimension_semantics=("parallel",),
            vmem_limit_bytes=vmem_limit,
        ),
    )(flat_ids, emb_table)

    return out_flat[:n].reshape(B, S, d_model)


if __name__ == "__main__":
    d_model = 512
    vocab = 1000

    # Same token ids as the module's example `x`.
    x = jnp.array([[100, 2, 421, 508], [491, 998, 1, 221]], dtype=jnp.int32)

    # Deterministic "weights" (stand-in for nn.Embedding's learned table).
    key = jax.random.PRNGKey(0)
    emb_table = jax.random.normal(key, (vocab, d_model), dtype=jnp.float32)

    out = embeddings_forward(x, emb_table)
    out = jax.block_until_ready(out)

    # Reference check in plain JAX (direct gather => should match tightly).
    ref = jnp.take(emb_table, x, axis=0) * math.sqrt(float(d_model))
    assert out.shape == (2, 4, d_model), out.shape
    assert jnp.allclose(out, ref, atol=1e-5, rtol=1e-5), float(
        jnp.max(jnp.abs(out - ref)))

    print("KERNEL_OK")
</pallas_src>

<mosaic_0001>
module attributes {stable_mosaic.version = 11 : i64} {
  func.func @_embed_resident_kernel(%arg0: i32, %arg1: memref<8xi32, #tpu.memory_space<smem>>, %arg2: memref<1000x512xf32, #tpu.memory_space<vmem>>, %arg3: memref<8x512xf32, #tpu.memory_space<vmem>>) attributes {dimension_semantics = [#tpu.dimension_semantics<parallel>], iteration_bounds = array<i64: 1>, scalar_prefetch = 1 : i64, scratch_operands = 0 : i64, tpu.core_type = #tpu.core_type<tc>, window_params = [{pipeline_mode = #tpu.pipeline_mode<synchronous>, transform_indices = @transform_0, window_bounds = array<i64: 1000, 512>}, {transform_indices = @transform_1, window_bounds = array<i64: 8, 512>}]} {
    %c8_i32 = arith.constant 8 : i32
    %0 = arith.muli %arg0, %c8_i32 : i32
    %c0_i32 = arith.constant 0 : i32
    %c8_i32_0 = arith.constant 8 : i32
    %1 = arith.addi %c0_i32, %c8_i32_0 : i32
    %c1_i32 = arith.constant 1 : i32
    scf.for %arg4 = %c0_i32 to %1 step %c1_i32  : i32 {
      %2 = arith.addi %0, %arg4 : i32
      %3 = arith.index_cast %2 : i32 to index
      %4 = memref.load %arg1[%3] : memref<8xi32, #tpu.memory_space<smem>>
      %5 = arith.index_cast %4 : i32 to index
      %c0 = arith.constant 0 : index
      %6 = vector.load %arg2[%5, %c0] : memref<1000x512xf32, #tpu.memory_space<vmem>>, vector<1x512xf32>
      %cst = arith.constant 22.6274166 : f32
      %7 = vector.broadcast %cst : f32 to vector<1x512xf32>
      %8 = arith.mulf %6, %7 : vector<1x512xf32>
      %9 = arith.index_cast %arg4 : i32 to index
      %c0_2 = arith.constant 0 : index
      %10 = vector.load %arg3[%9, %c0_2] : memref<8x512xf32, #tpu.memory_space<vmem>>, vector<1x512xf32>
      tpu.vector_store %arg3[%9, %c0_2], %8 {strides = array<i32>} : memref<8x512xf32, #tpu.memory_space<vmem>>, vector<1x512xf32>,
    }
    %c8_i32_1 = arith.constant 8 : i32
    return
  }
  func.func @transform_0(%arg0: i32, %arg1: memref<8xi32, #tpu.memory_space<smem>>) -> (i32, i32) {
    %c0_i32 = arith.constant 0 : i32
    %c0_i32_0 = arith.constant 0 : i32
    %c0_i32_1 = arith.constant 0 : i32
    return %c0_i32, %c0_i32_0 : i32, i32
  }
  func.func @transform_1(%arg0: i32, %arg1: memref<8xi32, #tpu.memory_space<smem>>) -> (i32, i32) {
    %c0_i32 = arith.constant 0 : i32
    %c0_i32_0 = arith.constant 0 : i32
    return %arg0, %c0_i32 : i32, i32
  }
}

</mosaic_0001>

<bundles_post_ra>
// kernel: tpu_custom_call.1
= control target key start
LH: loop header
LB: loop body
LE: loop exit
PB: predicated region body
PF: predicated region fallthrough
CT: control target
= control target key end

     0   :  { %s188_s12 = smov [#allocation3]   ;;  %s217_s0 = inlined_call_operand.hbm [shape: s32[8], index: 0, kind: input, shape index: {}]   ;;  %s218_s1 = inlined_call_operand.hbm [shape: f32[1000,512], index: 1, kind: input, shape index: {}]   ;;  %s219_s2 = inlined_call_operand.hbm [shape: f32[8,512], index: 2, kind: output, shape index: {}]  }
   0x1   :  { %s8_s11 = sshll.u32 %s217_s0, 4  ;;  %s9_s11 = int_to_ptr.hbm [resolvable:$true] %s8_s11 }
   0x2   :  { %11 = dma.hbm_to_smem %s9_s11, 16, %s188_s12, [#allocation2] }
   0x3   :  { %178 = dma.done.wait [#allocation2], 16 }
   0x4   :  { %179 = vsyncadd [#allocation2], 4294967280 }
   0x5   :  { %14 = sfence }
   0x6   :  { %15 = vsyncpa [#allocation5], 0 }
   0x7   :  { %16 = vsyncpa [#allocation6], 0  ;;  %s21_s15 = sshll.u32 %s218_s1, 4  ;;  %s189_s16 = smov [#allocation4]   ;;  %s22_s15 = int_to_ptr.hbm [resolvable:$true] %s21_s15 }
   0x8   :  { %s23_s17 = sshll.u32 %s189_s16, 4  ;;  %s190_s18 = smov 512   ;;  %s24_s17 = int_to_ptr.vmem [resolvable:$true] %s23_s17 }
   0x9   :  { %s191_s19 = smov 32  }
   0xa   :  { %29 = dma.hbm_to_vmem [thread:$0]  %s22_s15, 64000, %s24_s17, [#allocation5], %s190_s18, %s190_s18, %s191_s19  }
   0xb   :  { %180 = dma.done.wait [#allocation5], 64000  }
   0xc   :  { %181 = vsyncadd [#allocation5], 4294903296  ;;  %s184_s0 = smov 0  }
   0xd LB: > { %s42_s20 = sld [smem:[#allocation3 + %s186_s0]]  ;;  %s57_s21 = sshra.s32 %s186_s0, 3  ;;  %v53_v0 = vlaneseq  ;;  %s186_s0 = sphi %s184_s0, %s40_s0  }
   0xe   : > { %s60_s22 = sand.u32 7, %s186_s0  ;;  %s100_s23 = sshll.u32 %s57_s21, 5 }
   0xf   : > { %s63_s26 = sadd.s32 %s100_s23, %s60_s22  ;;  %vm55_vm0 = vcmp.lt.s32.totalorder %v53_v0, 512  ;;  %s40_s0 = sadd.s32 1, %s186_s0  }
  0x10   : > { %s64_s29 = scalar_lea.vmem [#allocation7], %s63_s26  ;;  %p37_p0 = scmp.ge.s32.totalorder %s40_s0, 8  }
  0x11   :  { %s74_s4 = sshll.u32 (%p37_p0), %s219_s2, 4  ;;  %s192_s5 = smov (%p37_p0), [#allocation7]   ;;  %s75_s4 = int_to_ptr.hbm [resolvable:$true] %s74_s4 }
  0x12   :  { %s72_s6 = sshll.u32 (%p37_p0), %s192_s5, 4  ;;  %s73_s6 = int_to_ptr.vmem [resolvable:$true] %s72_s6 }
  0x13   : > { %s43_s24 = sshra.s32 %s42_s20, 3  ;;  %s46_s25 = sand.u32 7, %s42_s20 }
  0x14   : > { %s99_s1 = sshll.u32 %s43_s24, 5 }
  0x15   : > { %s49_s27 = sadd.s32 %s99_s1, %s46_s25 }
  0x16   : > { %s50_s28 = scalar_lea.vmem [#allocation4], %s49_s27  ;;  %39 = sbr.rel (!%p37_p0) target bundleno = 13 (0xd), region = 37 }
  0x17   : > { %v51_v1 = vld [vmem:[%s50_s28] ss:$8 sm:$0xf] }
  0x18   : > { %v52_v2 = vmul.f32 22.627417, %v51_v1 }
  0x1a   : > { %65 = vst.msk [vmem:[%s64_s29] ss:$8 sm:$0xf] %vm55_vm0, %v52_v2 }
  0x1b   :  { %77 = dma.vmem_to_hbm [thread:$0]  %s73_s6, 512, %s75_s4, [#allocation6]  }
  0x1c   :  { %182 = dma.done.wait [#allocation6], 512  }
  0x1d   :  { %183 = vsyncadd [#allocation6], 4294966784 }
  0x1e   :  { %82 = vsyncpa [#allocation5], 1 }
  0x1f   :  { %83 = vsyncpa [#allocation6], 1 }

</bundles_post_ra>
